<compile_context>
chip_gen: v7x
topology: tpu7x:2x2x1
jax: 0.10.0
libtpu: 0.0.40
codegen_flags: <defaults>
</compile_context>

<pallas_src>
import functools

import jax
import jax.numpy as jnp
from jax.experimental import pallas as pl
from jax.experimental.pallas import tpu as pltpu

_LANE = 128        # lane width: output / K tiles are multiples of this
_MAX_TILE = 512    # cap on row / reduction / column tiles (VMEM-safe everywhere)


def _round_up(x, m):
    return -(-x // m) * m


def _pad_and_ktile(d):
    """Padded extent and tile size for a dim used as rows and/or matmul K."""
    if d <= _MAX_TILE:
        dp = _round_up(d, _LANE)
        return dp, dp
    dp = _round_up(d, _MAX_TILE)
    return dp, _MAX_TILE


def _pick_col_tile(total_cols, cap=_MAX_TILE):
    """Largest multiple of _LANE <= cap that divides total_cols (a multiple of _LANE)."""
    t = min(cap, total_cols)
    t -= t % _LANE
    while t > _LANE and total_cols % t:
        t -= _LANE
    return t


# --------------------------- Pallas kernels ---------------------------------

def _proj_kernel(num_k, x_ref, w_ref, o_ref, acc_ref):
    """Tiled matmul: P = X @ W_cat, f32 accumulate, cast to o_ref dtype."""
    part = jnp.dot(x_ref[...], w_ref[...], preferred_element_type=jnp.float32)

    if num_k == 1:                       # static: skip acc scratch roundtrip
        o_ref[...] = part.astype(o_ref.dtype)
        return

    @pl.when(pl.program_id(2) == 0)
    def _():
        acc_ref[...] = jnp.zeros_like(acc_ref)

    acc_ref[...] += part

    @pl.when(pl.program_id(2) == num_k - 1)
    def _():
        o_ref[...] = acc_ref[...].astype(o_ref.dtype)


def _project(x_bf16, w_bf16, *, tm, tk):
    m, k = x_bf16.shape
    _, n = w_bf16.shape
    # Hold as many W_cat columns resident as possible per k-block so the big
    # operand X is not re-streamed across the j axis.
    tn = _pick_col_tile(n)
    num_k = k // tk
    return pl.pallas_call(
        functools.partial(_proj_kernel, num_k),
        out_shape=jax.ShapeDtypeStruct((m, n), jnp.bfloat16),
        grid_spec=pltpu.PrefetchScalarGridSpec(
            num_scalar_prefetch=0,
            grid=(m // tm, n // tn, num_k),
            in_specs=[
                pl.BlockSpec((tm, tk), lambda i, j, kk: (i, kk)),
                pl.BlockSpec((tk, tn), lambda i, j, kk: (kk, j)),
            ],
            out_specs=pl.BlockSpec((tm, tn), lambda i, j, kk: (i, j)),
            scratch_shapes=[pltpu.VMEM((tm, tn), jnp.float32)]),
        compiler_params=pltpu.CompilerParams(
            dimension_semantics=("parallel", "parallel", "arbitrary")),
    )(x_bf16, w_bf16)


def _agg_kernel(num_k, apply_relu, a_ref, pn_ref, pr_ref, dinv_ref, b_ref,
                o_ref, acc_ref):
    """out = dinv * (A @ P_neigh) + P_root + b (+ ReLU); scale/bias at k==last."""
    k = pl.program_id(2)
    # A is int8 edge counts in HBM/VMEM (half the bytes of bf16); cast to bf16
    # on the VPU right before the MXU dot -> exact and portable on all chips.
    a_bf = a_ref[...].astype(jnp.bfloat16)
    part = jnp.dot(a_bf, pn_ref[...], preferred_element_type=jnp.float32)

    def _finalize(total):
        out = (total * dinv_ref[...]                    # exact f32 1/deg scale
               + pr_ref[...].astype(jnp.float32)
               + b_ref[...].astype(jnp.float32))
        if apply_relu:
            out = jnp.maximum(out, 0.0)
        o_ref[...] = out.astype(o_ref.dtype)

    if num_k == 1:                       # static: no accumulator needed
        _finalize(part)
        return

    @pl.when(k == 0)
    def _():
        acc_ref[...] = jnp.zeros_like(acc_ref)

    acc_ref[...] += part

    @pl.when(k == num_k - 1)
    def _():
        _finalize(acc_ref[...])


def _aggregate(a_i8, p_bf16, dinv_f32, b_f32, *, tm, tk, h_pad, apply_relu,
               out_dtype):
    n_pad = a_i8.shape[0]
    # tn = min(h_pad, 512): h_blocks == 1 for typical H, so the dominant N^2
    # A stream is read from HBM exactly once.
    tn = _pick_col_tile(h_pad)
    h_blocks = h_pad // tn
    num_k = n_pad // tk
    return pl.pallas_call(
        functools.partial(_agg_kernel, num_k, apply_relu),
        out_shape=jax.ShapeDtypeStruct((n_pad, h_pad), out_dtype),
        grid_spec=pltpu.PrefetchScalarGridSpec(
            num_scalar_prefetch=0,
            grid=(n_pad // tm, h_blocks, num_k),
            in_specs=[
                pl.BlockSpec((tm, tk), lambda i, j, k: (i, k)),             # A (int8 counts)
                pl.BlockSpec((tk, tn), lambda i, j, k: (k, j)),             # P[:, :H]
                pl.BlockSpec((tm, tn), lambda i, j, k: (i, h_blocks + j)),  # P[:, H:]
                pl.BlockSpec((tm, 1), lambda i, j, k: (i, 0)),              # 1/deg (f32)
                pl.BlockSpec((1, tn), lambda i, j, k: (0, j)),              # bias
            ],
            out_specs=pl.BlockSpec((tm, tn), lambda i, j, k: (i, j)),
            scratch_shapes=[pltpu.VMEM((tm, tn), jnp.float32)]),
        compiler_params=pltpu.CompilerParams(
            dimension_semantics=("parallel", "parallel", "arbitrary")),
    )(a_i8, p_bf16, p_bf16, dinv_f32, b_f32)


def sage_layer(a_i8, dinv, x, w_cat_f32, b_f32, *, n_tile, k_tile, h_pad,
               apply_relu, out_dtype):
    """One SAGEConv layer on padded inputs.  Returns [Np, Hp] `out_dtype`."""
    x_bf = x if x.dtype == jnp.bfloat16 else x.astype(jnp.bfloat16)
    p = _project(x_bf, w_cat_f32.astype(jnp.bfloat16), tm=n_tile, tk=k_tile)
    return _aggregate(a_i8, p, dinv, b_f32, tm=n_tile, tk=n_tile,
                      h_pad=h_pad, apply_relu=apply_relu, out_dtype=out_dtype)


# ------------------------------- glue (JAX) ---------------------------------

def build_adj_counts(edge_index, num_nodes):
    """int8 edge-count adjacency (j -> i) and f32 inverse in-degree column."""
    src, dst = edge_index[0], edge_index[1]
    # TODO(synk): for large N build directly in a compact/CSR form; int8 counts
    #             assume < 128 parallel edges between any single (i, j) pair.
    a = jnp.zeros((num_nodes, num_nodes), jnp.int32)
    a = a.at[dst, src].add(1)
    deg = jnp.sum(a, axis=1, keepdims=True).astype(jnp.float32)
    dinv = 1.0 / jnp.maximum(deg, 1.0)
    return a.astype(jnp.int8), dinv


def _pad2(x, rows, cols):
    return jnp.pad(x, ((0, rows - x.shape[0]), (0, cols - x.shape[1])))


def _pad_weight_cat(w_l, w_r, f_pad, h_pad):
    return jnp.concatenate(
        [_pad2(w_l, f_pad, h_pad), _pad2(w_r, f_pad, h_pad)], axis=1)


def stand_sage_encoder(params, x, edge_index, edge_weight=None, dropout_p=0.5):
    """Forward pass of StandSAGEEncoder (eval mode: dropout is identity)."""
    del edge_weight  # SAGEConv.forward ignores edge_weight
    n, f = x.shape
    nhid = params["w1_l"].shape[1]
    nembed = params["w2_l"].shape[1]

    n_pad, n_tile = _pad_and_ktile(n)
    f_pad, f_tile = _pad_and_ktile(f)
    h1_pad, h1_tile = _pad_and_ktile(nhid)
    h2_pad = _round_up(nembed, _LANE)

    a_i8, dinv = build_adj_counts(edge_index, n)
    a_p = _pad2(a_i8, n_pad, n_pad)
    dinv_p = jnp.pad(dinv, ((0, n_pad - n), (0, 0)), constant_values=1.0)
    x_p = _pad2(x, n_pad, f_pad)

    w1 = _pad_weight_cat(params["w1_l"], params["w1_r"], f_pad, h1_pad)
    b1 = _pad2(params["b1"], 1, h1_pad)
    w2 = _pad_weight_cat(params["w2_l"], params["w2_r"], h1_pad, h2_pad)
    b2 = _pad2(params["b2"], 1, h2_pad)

    # Layer-1 intermediate stays bf16 (layer 2's projection uses bf16 anyway).
    h = sage_layer(a_p, dinv_p, x_p, w1, b1, n_tile=n_tile, k_tile=f_tile,
                   h_pad=h1_pad, apply_relu=True, out_dtype=jnp.bfloat16)
    # F.dropout(..., training=False) -> identity.
    out = sage_layer(a_p, dinv_p, h, w2, b2, n_tile=n_tile, k_tile=h1_tile,
                     h_pad=h2_pad, apply_relu=False, out_dtype=jnp.float32)
    return out[:n, :nembed]


def init_linear(key, fan_in, fan_out, with_bias):
    """Deterministic init mimicking torch.nn.Linear.reset_parameters bounds."""
    kw, kb = jax.random.split(key)
    bound = 1.0 / jnp.sqrt(jnp.float32(fan_in))
    w = jax.random.uniform(kw, (fan_in, fan_out), jnp.float32, -bound, bound)
    b = (jax.random.uniform(kb, (1, fan_out), jnp.float32, -bound, bound)
         if with_bias else None)
    return w, b


def init_stand_sage_encoder(key, nfeat, nhid, nembed):
    k1, k2, k3, k4 = jax.random.split(key, 4)
    w1_l, b1 = init_linear(k1, nfeat, nhid, with_bias=True)    # conv1.lin_l
    w1_r, _ = init_linear(k2, nfeat, nhid, with_bias=False)    # conv1.temp_weight
    w2_l, b2 = init_linear(k3, nhid, nembed, with_bias=True)   # conv2.lin_l
    w2_r, _ = init_linear(k4, nhid, nembed, with_bias=False)   # conv2.temp_weight
    return dict(w1_l=w1_l, b1=b1, w1_r=w1_r, w2_l=w2_l, b2=b2, w2_r=w2_r)


# ------------------------------ references ----------------------------------

def _bf16(v):
    return v.astype(jnp.bfloat16).astype(jnp.float32)


def _reference_bf16(params, x, edge_index):
    """Mirrors kernel numerics (bf16 projections, f32 accumulation, f32 1/deg)."""
    a_i8, dinv = build_adj_counts(edge_index, x.shape[0])
    a = a_i8.astype(jnp.float32)

    def layer(xx, wl, wr, b, relu, out_bf16):
        xb = _bf16(xx)
        p_l = _bf16(xb @ _bf16(wl))
        p_r = _bf16(xb @ _bf16(wr))
        out = dinv * (a @ p_l) + p_r + b
        if relu:
            out = jnp.maximum(out, 0.0)
        return _bf16(out) if out_bf16 else out

    h = layer(x, params["w1_l"], params["w1_r"], params["b1"], True, True)
    return layer(h, params["w2_l"], params["w2_r"], params["b2"], False, False)


def _reference_f32(params, x, edge_index):
    a_i8, dinv = build_adj_counts(edge_index, x.shape[0])
    a = dinv * a_i8.astype(jnp.float32)
    h = jnp.maximum(
        (a @ x) @ params["w1_l"] + x @ params["w1_r"] + params["b1"], 0.0)
    return (a @ h) @ params["w2_l"] + h @ params["w2_r"] + params["b2"]


# ---------------------------------- main -------------------------------------

if __name__ == "__main__":
    def _run_case(key, num_nodes, num_edges, nfeat, nhid, nembed):
        k_x, k_e, k_p = jax.random.split(key, 3)
        x = jax.random.normal(k_x, (num_nodes, nfeat), jnp.float32)
        edge_index = jax.random.randint(k_e, (2, num_edges), 0, num_nodes,
                                        dtype=jnp.int32)
        params = init_stand_sage_encoder(k_p, nfeat, nhid, nembed)

        out = stand_sage_encoder(params, x, edge_index, dropout_p=0.5)
        out = jax.block_until_ready(out)
        assert out.shape == (num_nodes, nembed)

        # Check against a reference that mirrors the kernel numerics ...
        ref_mirror = _reference_bf16(params, x, edge_index)
        assert jnp.allclose(out, ref_mirror, atol=2e-2, rtol=2e-2), \
            "mismatch vs bf16-mirror reference"
        # ... and loosely against the pure-f32 semantics.
        ref_f32 = _reference_f32(params, x, edge_index)
        assert jnp.allclose(out, ref_f32, atol=1e-1, rtol=1e-1), \
            "mismatch vs f32 reference"

    key = jax.random.PRNGKey(0)
    k_small, k_large = jax.random.split(key)

    # Small shapes consistent with the module (single k / j block everywhere).
    _run_case(k_small, num_nodes=8, num_edges=24, nfeat=16, nhid=32, nembed=16)
    # Larger case exercising the multi-k accumulation and multi-j column blocks
    # (padded dims 1024, tiles 512) on the same kernels.
    _run_case(k_large, num_nodes=600, num_edges=3000, nfeat=560, nhid=600,
              nembed=80)

    print("KERNEL_OK")
</pallas_src>

<mosaic_0001>
module attributes {stable_mosaic.version = 11 : i64} {
  func.func @_proj_kernel(%arg0: i32, %arg1: i32, %arg2: i32, %arg3: memref<128x128xbf16, #tpu.memory_space<vmem>>, %arg4: memref<128x256xbf16, #tpu.memory_space<vmem>>, %arg5: memref<128x256xbf16, #tpu.memory_space<vmem>>, %arg6: memref<128x256xf32, #tpu.memory_space<vmem>>) attributes {dimension_semantics = [#tpu.dimension_semantics<parallel>, #tpu.dimension_semantics<parallel>, #tpu.dimension_semantics<arbitrary>], iteration_bounds = array<i64: 1, 1, 1>, scalar_prefetch = 0 : i64, scratch_operands = 1 : i64, tpu.core_type = #tpu.core_type<tc>, window_params = [{transform_indices = @transform_0, window_bounds = array<i64: 128, 128>}, {transform_indices = @transform_1, window_bounds = array<i64: 128, 256>}, {transform_indices = @transform_2, window_bounds = array<i64: 128, 256>}]} {
    %c0 = arith.constant 0 : index
    %c0_0 = arith.constant 0 : index
    %0 = vector.load %arg3[%c0, %c0_0] : memref<128x128xbf16, #tpu.memory_space<vmem>>, vector<128x128xbf16>
    %c0_1 = arith.constant 0 : index
    %c0_2 = arith.constant 0 : index
    %1 = vector.load %arg4[%c0_1, %c0_2] : memref<128x256xbf16, #tpu.memory_space<vmem>>, vector<128x256xbf16>
    %cst = arith.constant dense<0.000000e+00> : vector<128x256xf32>
    %2 = tpu.matmul %0, %1, %cst {dimension_numbers = #tpu.dot_dimension_numbers<[1], [0], [0], [1], [0, 0, 1, 1], [], []>} : vector<128x128xbf16>, vector<128x256xbf16>, vector<128x256xf32> -> vector<128x256xf32>
    %3 = arith.truncf %2 : vector<128x256xf32> to vector<128x256xbf16>
    %c0_3 = arith.constant 0 : index
    %c0_4 = arith.constant 0 : index
    %4 = vector.load %arg5[%c0_3, %c0_4] : memref<128x256xbf16, #tpu.memory_space<vmem>>, vector<128x256xbf16>
    tpu.vector_store %arg5[%c0_3, %c0_4], %3 {strides = array<i32>} : memref<128x256xbf16, #tpu.memory_space<vmem>>, vector<128x256xbf16>,
    return
  }
  func.func @transform_0(%arg0: i32, %arg1: i32, %arg2: i32) -> (i32, i32) {
    %c0_i32 = arith.constant 0 : i32
    return %arg0, %arg2 : i32, i32
  }
  func.func @transform_1(%arg0: i32, %arg1: i32, %arg2: i32) -> (i32, i32) {
    %c0_i32 = arith.constant 0 : i32
    return %arg2, %arg1 : i32, i32
  }
  func.func @transform_2(%arg0: i32, %arg1: i32, %arg2: i32) -> (i32, i32) {
    %c0_i32 = arith.constant 0 : i32
    return %arg0, %arg1 : i32, i32
  }
}

</mosaic_0001>

<bundles_post_ra>
// kernel: tpu_custom_call.1
= control target key start
LH: loop header
LB: loop body
LE: loop exit
PB: predicated region body
PF: predicated region fallthrough
CT: control target
= control target key end

     0   :  { %7 = vsyncpa [#allocation4], 0  ;;  %s701_s0 = inlined_call_operand.hbm [shape: bf16[128,128], index: 0, kind: input, shape index: {}]   ;;  %s702_s1 = inlined_call_operand.hbm [shape: bf16[128,256], index: 1, kind: input, shape index: {}]   ;;  %s703_s2 = inlined_call_operand.hbm [shape: bf16[128,256], index: 2, kind: output, shape index: {}]  }
   0x1   :  { %8 = vsyncpa [#allocation7], 0 }
   0x2   :  { %9 = vsyncpa [#allocation5], 0  ;;  %s628_s9 = smov [#allocation3]   ;;  %s556_s13 = scalar_lea.hbm %s701_s0, 1024 }
   0x3   :  { %s15_s10 = sshll.u32 %s628_s9, 4  ;;  %p557_p0 = scmp.ne.s32.totalorder %s701_s0, %s556_s13  ;;  %s16_s10 = int_to_ptr.vmem [resolvable:$true] %s15_s10 }
   0x4   :  { %p560_p1 = scmp.lt.u32.totalorder %s556_s13, %s701_s0 }
   0x6   :  { %p562_p2 = pnand %p560_p1, %p557_p0 }
   0x8   :  { %565 = shalt.err (!%p562_p2)
}
   0x9   :  { %s566_s18 = scalar_lea.vmem %s16_s10, 1024  ;;  %p571_p4 = scmp.lt.s32.totalorder %s16_s10, %s16_s10 }
   0xa   :  { %p567_p3 = scmp.ne.s32.totalorder %s16_s10, %s566_s18  ;;  %p572_p5 = scmp.lt.s32.totalorder %s566_s18, %s566_s18 }
   0xc   :  { %p573_p6 = por %p572_p5, %p571_p4 }
   0xe   :  { %p574_p7 = pnand %p573_p6, %p567_p3 }
  0x10   :  { %577 = shalt.err (!%p574_p7)
}
  0x11   :  { %s629_s19 = smov 64   ;;  %s630_s20 = smov 4  }
  0x12   :  { %21 = dma.hbm_to_vmem [thread:$0]  %s701_s0, 1024, %s16_s10, [#allocation4], %s629_s19, %s629_s19, %s630_s20  }
  0x13   :  { %s631_s23 = smov [#allocation6]   ;;  %s578_s27 = scalar_lea.hbm %s702_s1, 2048 }
  0x14   :  { %s27_s24 = sshll.u32 %s631_s23, 4  ;;  %p579_p8 = scmp.ne.s32.totalorder %s702_s1, %s578_s27  ;;  %s28_s24 = int_to_ptr.vmem [resolvable:$true] %s27_s24 }
  0x15   :  { %p582_p9 = scmp.lt.u32.totalorder %s578_s27, %s702_s1 }
  0x17   :  { %p584_p10 = pnand %p582_p9, %p579_p8 }
  0x19   :  { %587 = shalt.err (!%p584_p10)
}
  0x1a   :  { %s588_s4 = scalar_lea.vmem %s28_s24, 2048  ;;  %p593_p12 = scmp.lt.s32.totalorder %s28_s24, %s28_s24 }
  0x1b   :  { %p589_p11 = scmp.ne.s32.totalorder %s28_s24, %s588_s4  ;;  %p594_p13 = scmp.lt.s32.totalorder %s588_s4, %s588_s4 }
  0x1d   :  { %p595_p0 = por %p594_p13, %p593_p12 }
  0x1f   :  { %p596_p1 = pnand %p595_p0, %p589_p11 }
  0x21   :  { %599 = shalt.err (!%p596_p1)
}
  0x22   :  { %s632_s0 = smov 128   ;;  %s633_s5 = smov 8  }
  0x23   :  { %33 = dma.hbm_to_vmem [thread:$0]  %s702_s1, 2048, %s28_s24, [#allocation7], %s632_s0, %s632_s0, %s633_s5  }
  0x24   :  { %622 = dma.done.wait [#allocation4], 1024  }
  0x25   :  { %623 = vsyncadd [#allocation4], 4294966272 }
  0x26   :  { %624 = dma.done.wait [#allocation7], 2048  }
  0x27   :  { %625 = vsyncadd [#allocation7], 4294965248  ;;  %v634_v0 = vmov 0   ;;  %v524_v1 = vld [vmem:[#allocation6 + $0x4] ss:$8 sps:$4 sm:$0xff]   ;;  %v552_v21 = vld [vmem:[#allocation3 + $0x10] sm:$0xff]  }
  0x28   :  { %233 = vmatprep.mubr.bf16.mxu0 %v634_v0  ;;  %273 = vmatprep.mubr.bf16.mxu1 %v634_v0  ;;  %v526_v2 = vld [vmem:[#allocation6] ss:$8 sps:$4 sm:$0xff]   ;;  %v527_v3 = vld [vmem:[#allocation6 + $0x14] ss:$8 sps:$4 sm:$0xff]   ;;  %v529_v4 = vld [vmem:[#allocation6 + $0x10] ss:$8 sps:$4 sm:$0xff]  }
  0x29   :  { %201 = vmatprep.subr.bf16.mxu0 %v524_v1  ;;  %500 = vmatprep.subr.bf16.mxu1 %v524_v1  ;;  %v530_v5 = vld [vmem:[#allocation6 + $0x24] ss:$8 sps:$4 sm:$0xff]   ;;  %v532_v6 = vld [vmem:[#allocation6 + $0x20] ss:$8 sps:$4 sm:$0xff]   ;;  %v533_v7 = vld [vmem:[#allocation6 + $0x34] ss:$8 sps:$4 sm:$0xff]  }
  0x2a   :  { %202 = vmatpush1.bf16.msra.mxu0 %v526_v2  ;;  %508 = vmatpush1.bf16.msra.mxu1 %v526_v2  ;;  %v535_v8 = vld [vmem:[#allocation6 + $0x30] ss:$8 sps:$4 sm:$0xff]   ;;  %v536_v9 = vld [vmem:[#allocation6 + $0x44] ss:$8 sps:$4 sm:$0xff]   ;;  %v538_v10 = vld [vmem:[#allocation6 + $0x40] ss:$8 sps:$4 sm:$0xff]  }
  0x2b   :  { %203 = vmatprep.subr.bf16.mxu0 %v527_v3  ;;  %501 = vmatprep.subr.bf16.mxu1 %v527_v3  ;;  %v539_v11 = vld [vmem:[#allocation6 + $0x54] ss:$8 sps:$4 sm:$0xff]   ;;  %v541_v12 = vld [vmem:[#allocation6 + $0x50] ss:$8 sps:$4 sm:$0xff]   ;;  %v542_v13 = vld [vmem:[#allocation6 + $0x64] ss:$8 sps:$4 sm:$0xff]  }
  0x2c   :  { %v544_v14 = vld [vmem:[#allocation6 + $0x60] ss:$8 sps:$4 sm:$0xff]   ;;  %v545_v15 = vld [vmem:[#allocation6 + $0x74] ss:$8 sps:$4 sm:$0xff]   ;;  %v547_v16 = vld [vmem:[#allocation6 + $0x70] ss:$8 sps:$4 sm:$0xff]  }
  0x2d   :  { %v548_v17 = vld [vmem:[#allocation3] sm:$0xff]   ;;  %v550_v19 = vld [vmem:[#allocation3 + $0x8] sm:$0xff]   ;;  %v553_v22 = vld [vmem:[#allocation3 + $0x30] sm:$0xff]   ;;  %s635_s1 = smov [#allocation8]  }
  0x2e   :  { %204 = vmatpush1.bf16.msra.mxu0 %v529_v4  ;;  %509 = vmatpush1.bf16.msra.mxu1 %v529_v4  ;;  %v549_v18 = vld [vmem:[#allocation3 + $0x20] sm:$0xff]   ;;  %v551_v20 = vld [vmem:[#allocation3 + $0x28] sm:$0xff]   ;;  %v554_v23 = vld [vmem:[#allocation3 + $0x18] sm:$0xff]   ;;  %s431_s8 = sshll.u32 %s635_s1, 4  ;;  %s432_s8 = int_to_ptr.vmem [resolvable:$true] %s431_s8 }
  0x2f   :  { %205 = vmatprep.subr.bf16.mxu0 %v530_v5  ;;  %502 = vmatprep.subr.bf16.mxu1 %v530_v5  ;;  %v555_v24 = vld [vmem:[#allocation3 + $0x38] sm:$0xff]   ;;  %s600_s9 = scalar_lea.vmem %s432_s8, 2048  ;;  %p605_p3 = scmp.lt.s32.totalorder %s432_s8, %s432_s8 }
  0x30   :  { %p601_p2 = scmp.ne.s32.totalorder %s432_s8, %s600_s9  ;;  %p606_p4 = scmp.lt.s32.totalorder %s600_s9, %s600_s9 }
  0x32   :  { %206 = vmatpush1.bf16.msra.mxu0 %v532_v6  ;;  %510 = vmatpush1.bf16.msra.mxu1 %v532_v6  ;;  %p607_p5 = por %p606_p4, %p605_p3 }
  0x33   :  { %207 = vmatprep.subr.bf16.mxu0 %v533_v7  ;;  %503 = vmatprep.subr.bf16.mxu1 %v533_v7 }
  0x34   :  { %p608_p6 = pnand %p607_p5, %p601_p2 }
  0x36   :  { %208 = vmatpush1.bf16.msra.mxu0 %v535_v8  ;;  %511 = vmatpush1.bf16.msra.mxu1 %v535_v8 }
  0x37   :  { %209 = vmatprep.subr.bf16.mxu0 %v536_v9  ;;  %504 = vmatprep.subr.bf16.mxu1 %v536_v9 }
  0x3a   :  { %210 = vmatpush1.bf16.msra.mxu0 %v538_v10  ;;  %512 = vmatpush1.bf16.msra.mxu1 %v538_v10 }
  0x3b   :  { %211 = vmatprep.subr.bf16.mxu0 %v539_v11  ;;  %505 = vmatprep.subr.bf16.mxu1 %v539_v11 }
  0x3e   :  { %212 = vmatpush1.bf16.msra.mxu0 %v541_v12  ;;  %513 = vmatpush1.bf16.msra.mxu1 %v541_v12 }
  0x3f   :  { %213 = vmatprep.subr.bf16.mxu0 %v542_v13  ;;  %506 = vmatprep.subr.bf16.mxu1 %v542_v13 }
  0x42   :  { %214 = vmatpush1.bf16.msra.mxu0 %v544_v14  ;;  %514 = vmatpush1.bf16.msra.mxu1 %v544_v14 }
  0x43   :  { %215 = vmatprep.subr.bf16.mxu0 %v545_v15  ;;  %507 = vmatprep.subr.bf16.mxu1 %v545_v15 }
  0x46   :  { %216 = vmatpush1.bf16.msra.mxu0 %v547_v16  ;;  %515 = vmatpush1.bf16.msra.mxu1 %v547_v16 }
  0x49   :  { %234 = vmatmul.mubr.bf16.vlgmr.msra.gmra.mrb[0].mxu0 %v548_v17  ;;  %274 = vmatmul.mubr.bf16.vlgmr.msra.gmra.mrb[0].mxu1 %v549_v18 }
  0x4a   :  { %243 = vmatprep.mubr.bf16.mxu0 %v634_v0  ;;  %283 = vmatprep.mubr.bf16.mxu1 %v634_v0 }
  0x51   :  { %244 = vmatmul.mubr.bf16.gmra.mrb[4].mxu0 %v550_v19  ;;  %284 = vmatmul.mubr.bf16.gmra.mrb[4].mxu1 %v551_v20 }
  0x52   :  { %253 = vmatprep.mubr.bf16.mxu0 %v634_v0  ;;  %293 = vmatprep.mubr.bf16.mxu1 %v634_v0 }
  0x59   :  { %254 = vmatmul.mubr.bf16.gmra.mrb[8].mxu0 %v552_v21  ;;  %294 = vmatmul.mubr.bf16.gmra.mrb[8].mxu1 %v553_v22 }
  0x5a   :  { %263 = vmatprep.mubr.bf16.mxu0 %v634_v0  ;;  %303 = vmatprep.mubr.bf16.mxu1 %v634_v0 }
  0x61   :  { %264 = vmatmul.mubr.bf16.gmra.mrb[12].mxu0 %v554_v23  ;;  %304 = vmatmul.mubr.bf16.gmra.mrb[12].mxu1 %v555_v24 }
 0x11c   :  { %v235_v25 = vpop.f32.mrb[0].mxu0  ;;  %v275_v26 = vpop.f32.mrb[0].mxu1 }
 0x11d   :  { %v237_v27 = vpop.f32.mrb[1].mxu0  ;;  %v277_v28 = vpop.f32.mrb[1].mxu1 }
 0x11e   :  { %v484_v29 = vpack.c.bf16 %v237_v27, %v235_v25  ;;  %v492_v30 = vpack.c.bf16 %v277_v28, %v275_v26  ;;  %v239_v31 = vpop.f32.mrb[2].mxu0  ;;  %v279_v32 = vpop.f32.mrb[2].mxu1 }
 0x11f   :  { %v241_v33 = vpop.f32.mrb[3].mxu0  ;;  %v281_v34 = vpop.f32.mrb[3].mxu1 }
 0x120   :  { %410 = vst [vmem:[#allocation8] sm:$0xff] %v484_v29  ;;  %418 = vst [vmem:[#allocation8 + $0x40] sm:$0xff] %v492_v30  ;;  %v485_v35 = vpack.c.bf16 %v241_v33, %v239_v31  ;;  %v493_v36 = vpack.c.bf16 %v281_v34, %v279_v32 }
 0x122   :  { %411 = vst [vmem:[#allocation8 + $0x8] sm:$0xff] %v485_v35  ;;  %419 = vst [vmem:[#allocation8 + $0x48] sm:$0xff] %v493_v36 }
 0x124   :  { %v245_v37 = vpop.f32.mrb[4].mxu0  ;;  %v285_v38 = vpop.f32.mrb[4].mxu1 }
 0x125   :  { %v247_v39 = vpop.f32.mrb[5].mxu0  ;;  %v287_v40 = vpop.f32.mrb[5].mxu1 }
 0x126   :  { %v486_v41 = vpack.c.bf16 %v247_v39, %v245_v37  ;;  %v494_v42 = vpack.c.bf16 %v287_v40, %v285_v38  ;;  %v249_v43 = vpop.f32.mrb[6].mxu0  ;;  %v289_v44 = vpop.f32.mrb[6].mxu1 }
 0x127   :  { %v251_v45 = vpop.f32.mrb[7].mxu0  ;;  %v291_v46 = vpop.f32.mrb[7].mxu1 }
 0x128   :  { %412 = vst [vmem:[#allocation8 + $0x10] sm:$0xff] %v486_v41  ;;  %420 = vst [vmem:[#allocation8 + $0x50] sm:$0xff] %v494_v42  ;;  %v487_v47 = vpack.c.bf16 %v251_v45, %v249_v43  ;;  %v495_v48 = vpack.c.bf16 %v291_v46, %v289_v44 }
 0x12a   :  { %413 = vst [vmem:[#allocation8 + $0x18] sm:$0xff] %v487_v47  ;;  %421 = vst [vmem:[#allocation8 + $0x58] sm:$0xff] %v495_v48 }
 0x12c   :  { %v255_v49 = vpop.f32.mrb[8].mxu0  ;;  %v295_v50 = vpop.f32.mrb[8].mxu1 }
 0x12d   :  { %v257_v51 = vpop.f32.mrb[9].mxu0  ;;  %v297_v52 = vpop.f32.mrb[9].mxu1 }
 0x12e   :  { %v488_v53 = vpack.c.bf16 %v257_v51, %v255_v49  ;;  %v496_v54 = vpack.c.bf16 %v297_v52, %v295_v50  ;;  %v259_v55 = vpop.f32.mrb[10].mxu0  ;;  %v299_v56 = vpop.f32.mrb[10].mxu1 }
 0x12f   :  { %v261_v57 = vpop.f32.mrb[11].mxu0  ;;  %v301_v58 = vpop.f32.mrb[11].mxu1 }
 0x130   :  { %414 = vst [vmem:[#allocation8 + $0x20] sm:$0xff] %v488_v53  ;;  %422 = vst [vmem:[#allocation8 + $0x60] sm:$0xff] %v496_v54  ;;  %v489_v59 = vpack.c.bf16 %v261_v57, %v259_v55  ;;  %v497_v60 = vpack.c.bf16 %v301_v58, %v299_v56 }
 0x132   :  { %415 = vst [vmem:[#allocation8 + $0x28] sm:$0xff] %v489_v59  ;;  %423 = vst [vmem:[#allocation8 + $0x68] sm:$0xff] %v497_v60 }
 0x134   :  { %v265_v61 = vpop.f32.mrb[12].mxu0  ;;  %v305_v62 = vpop.f32.mrb[12].mxu1 }
 0x135   :  { %v267_v63 = vpop.f32.mrb[13].mxu0  ;;  %v307_v0 = vpop.f32.mrb[13].mxu1 }
 0x136   :  { %v490_v1 = vpack.c.bf16 %v267_v63, %v265_v61  ;;  %v498_v2 = vpack.c.bf16 %v307_v0, %v305_v62  ;;  %v269_v3 = vpop.f32.mrb[14].mxu0  ;;  %v309_v4 = vpop.f32.mrb[14].mxu1 }
 0x137   :  { %v271_v5 = vpop.f32.mrb[15].mxu0  ;;  %v311_v6 = vpop.f32.mrb[15].mxu1 }
 0x138   :  { %416 = vst [vmem:[#allocation8 + $0x30] sm:$0xff] %v490_v1  ;;  %424 = vst [vmem:[#allocation8 + $0x70] sm:$0xff] %v498_v2  ;;  %v491_v7 = vpack.c.bf16 %v271_v5, %v269_v3  ;;  %v499_v8 = vpack.c.bf16 %v311_v6, %v309_v4 }
 0x13a   :  { %417 = vst [vmem:[#allocation8 + $0x38] sm:$0xff] %v491_v7  ;;  %425 = vst [vmem:[#allocation8 + $0x78] sm:$0xff] %v499_v8 }
 0x13b   :  { %611 = shalt.err (!%p608_p6)
}
 0x13c   :  { %s612_s12 = scalar_lea.hbm %s703_s2, 2048 }
 0x13d   :  { %p613_p7 = scmp.ne.s32.totalorder %s703_s2, %s612_s12  ;;  %p616_p8 = scmp.lt.u32.totalorder %s612_s12, %s703_s2 }
 0x13f   :  { %p618_p9 = pnand %p616_p8, %p613_p7 }
 0x141   :  { %621 = shalt.err (!%p618_p9)
}
 0x142   :  { %437 = dma.vmem_to_hbm [thread:$0]  %s432_s8, 2048, %s703_s2, [#allocation5], %s632_s0, %s632_s0, %s633_s5  }
 0x143   :  { %626 = dma.done.wait [#allocation5], 2048  }
 0x144   :  { %627 = vsyncadd [#allocation5], 4294965248 }
 0x145   :  { %441 = vsyncpa [#allocation4], 1 }
 0x146   :  { %442 = vsyncpa [#allocation7], 1 }
 0x147   :  { %443 = vsyncpa [#allocation5], 1 }

</bundles_post_ra>
